<compile_context>
chip_gen: v6e
topology: v6e:2x2x1
jax: 0.10.0
libtpu: 0.0.40
codegen_flags: <defaults>
</compile_context>

<pallas_src>
import functools

import jax
import jax.numpy as jnp
from jax.experimental import pallas as pl
from jax.experimental.pallas import tpu as pltpu


# --------------------------------------------------------------------------- #
# Helpers
# --------------------------------------------------------------------------- #
def _round_up(v, m):
    return ((v + m - 1) // m) * m


def _cdiv(a, b):
    return (a + b - 1) // b


def _balanced_tile(dim, tile_max, align):
    """Tile <= ~tile_max that splits `dim` into near-equal aligned blocks,
    minimizing zero-padding waste (e.g. dim=300, max=512 -> 304, not 512)."""
    dim = max(dim, 1)
    tile_max = max(align, _round_up(min(tile_max, dim), align))
    n_blocks = _cdiv(dim, tile_max)
    return _round_up(_cdiv(dim, n_blocks), align)


def _vmem_budget_bytes():
    """Generation-aware VMEM cap: ~48 MiB on v7x (64 MiB physical per TC),
    ~96 MiB on v5e/v6e (128 MiB physical)."""
    default_phys = 64 * 1024 * 1024  # conservative (v7x) fallback
    try:
        info = pltpu.get_tpu_info()
        phys = getattr(info, "vmem_capacity_bytes", default_phys)
    except Exception:  # not on TPU / API unavailable
        phys = default_phys
    return min(int(phys * 3 // 4), 112 * 1024 * 1024)


def _footprint_bytes(tm, tn, tk, in_bytes, out_bytes, needs_scratch):
    x_tile = tm * tk * in_bytes * 2   # double-buffered activation tile
    w_tile = tk * tn * in_bytes * 2   # double-buffered weight tile
    o_tile = tm * tn * out_bytes * 2  # double-buffered output tile
    acc = tm * tn * 4 if needs_scratch else 0
    return x_tile + w_tile + o_tile + acc


def _plan_tiles(batch_hint, in_features, out_features, in_dtype, out_dtype, budget):
    in_bytes = jnp.dtype(in_dtype).itemsize
    out_bytes = jnp.dtype(out_dtype).itemsize
    needs_scratch = jnp.dtype(out_dtype) != jnp.dtype(jnp.float32)
    sub_align = 16 if in_bytes == 2 else 8            # packed sublanes for bf16
    n_align = 256 if out_features >= 256 else 128     # 2x256^2 MXU on v6e/v7x
    k_align = 256 if in_features >= 256 else 128

    tm = _balanced_tile(batch_hint, 512, sub_align)
    tn = _balanced_tile(out_features, 1024, n_align)
    tk = _balanced_tile(in_features, 2048, k_align)

    # Shrink (tk first, then tn, then tm) until the working set fits the
    # per-generation VMEM budget.
    while _footprint_bytes(tm, tn, tk, in_bytes, out_bytes, needs_scratch) > budget:
        if tk > k_align:
            tk = max(k_align, _round_up(tk // 2, k_align))
        elif tn > n_align:
            tn = max(n_align, _round_up(tn // 2, n_align))
        elif tm > sub_align:
            tm = max(sub_align, _round_up(tm // 2, sub_align))
        else:
            break
    return tm, tn, tk


# --------------------------------------------------------------------------- #
# Kernels
# --------------------------------------------------------------------------- #
def _matmul_kernel_out_acc(x_ref, w_ref, o_ref, *, precision):
    """f32 output: accumulate directly into the resident output tile.

    The output BlockSpec index_map is (i, j) (independent of k), so the tile
    stays live in VMEM across the K reduction — no scratch, no epilogue copy.
    """
    @pl.when(pl.program_id(2) == 0)
    def _():
        o_ref[...] = jnp.zeros_like(o_ref)

    o_ref[...] += jnp.dot(
        x_ref[...], w_ref[...],
        preferred_element_type=jnp.float32, precision=precision)


def _matmul_kernel_scratch_acc(x_ref, w_ref, o_ref, acc_ref, *, precision):
    """Low-precision output: f32 VMEM accumulator, cast/store on the last K step."""
    @pl.when(pl.program_id(2) == 0)
    def _():
        acc_ref[...] = jnp.zeros_like(acc_ref)

    acc_ref[...] += jnp.dot(
        x_ref[...], w_ref[...],
        preferred_element_type=jnp.float32, precision=precision)

    @pl.when(pl.program_id(2) == pl.num_programs(2) - 1)
    def _():
        o_ref[...] = acc_ref[...].astype(o_ref.dtype)


# --------------------------------------------------------------------------- #
# Module wrapper
# --------------------------------------------------------------------------- #
class LinearHeaderPallas:
    """Pallas TPU equivalent of LinearHeader: forward(input, label) -> input @ W^T.

    weight: (out_features, in_features)  (PyTorch nn.Linear layout, bias=False)
    compute_dtype: optional MXU feed dtype (e.g. jnp.bfloat16 for ~3x MXU
        throughput and half the weight HBM bytes; accumulation stays f32).
    precision: optional lax.Precision for the in-kernel dot (f32 operands only).

    The weight transpose / pad / cast is done ONCE here, not per forward call.
    """

    def __init__(self, weight, *, compute_dtype=None, precision=None):
        weight = jnp.asarray(weight)
        self.out_features, self.in_features = weight.shape
        self.compute_dtype = (jnp.dtype(compute_dtype) if compute_dtype is not None
                              else weight.dtype)
        self.precision = precision
        self._budget = _vmem_budget_bytes()

        # tn / tk are batch-independent; plan them assuming tm_max=512 so the
        # padded weight layout is fixed for the lifetime of the header.
        _, self._tn, self._tk = _plan_tiles(
            512, self.in_features, self.out_features,
            self.compute_dtype, jnp.float32, self._budget)

        K = _round_up(self.in_features, self._tk)
        N = _round_up(self.out_features, self._tn)
        w_t = weight.T.astype(self.compute_dtype)            # (IN, OUT): MXU-ready
        if (K, N) != w_t.shape:
            w_t = jnp.pad(w_t, ((0, K - self.in_features),
                                (0, N - self.out_features)))
        self._w = w_t                                         # (K, N), hoisted
        self._K, self._N = K, N

    def __call__(self, x, label=None):
        del label  # unused, matching LinearHeader.forward(input, label)
        B, IN = x.shape
        assert IN == self.in_features, "in_features mismatch"

        out_dtype = x.dtype
        in_bytes = jnp.dtype(self.compute_dtype).itemsize
        needs_scratch = jnp.dtype(out_dtype) != jnp.dtype(jnp.float32)
        sub_align = 16 if in_bytes == 2 else 8

        tn, tk = self._tn, self._tk
        K, N = self._K, self._N
        tm = _balanced_tile(B, 512, sub_align)
        M = _round_up(B, tm)

        x_c = x.astype(self.compute_dtype)
        if (M, K) != (B, IN):
            x_c = jnp.pad(x_c, ((0, M - B), (0, K - IN)))

        if needs_scratch:
            kernel = functools.partial(_matmul_kernel_scratch_acc,
                                       precision=self.precision)
            scratch = [pltpu.VMEM((tm, tn), jnp.float32)]
        else:
            kernel = functools.partial(_matmul_kernel_out_acc,
                                       precision=self.precision)
            scratch = []

        flops = 2 * M * N * K
        bytes_accessed = ((M * K + K * N) * in_bytes
                          + M * N * jnp.dtype(out_dtype).itemsize)

        out = pl.pallas_call(
            kernel,
            out_shape=jax.ShapeDtypeStruct((M, N), out_dtype),
            grid_spec=pltpu.PrefetchScalarGridSpec(
                num_scalar_prefetch=0,
                grid=(M // tm, N // tn, K // tk),
                in_specs=[
                    pl.BlockSpec((tm, tk), lambda i, j, k: (i, k)),
                    pl.BlockSpec((tk, tn), lambda i, j, k: (k, j)),
                ],
                out_specs=pl.BlockSpec((tm, tn), lambda i, j, k: (i, j)),
                scratch_shapes=scratch,
            ),
            compiler_params=pltpu.CompilerParams(
                # M/N shard across v7x's 2 TensorCores; K is the reduction.
                # (For tiny heads the grid may be (1,1,1) and one core idles —
                # that is inherent to the problem size.)
                dimension_semantics=("parallel", "parallel", "arbitrary"),
                vmem_limit_bytes=self._budget,
            ),
            cost_estimate=pl.CostEstimate(
                flops=flops, bytes_accessed=bytes_accessed, transcendentals=0),
        )(x_c, self._w)

        if (M, N) != (B, self.out_features):
            out = out[:B, :self.out_features]
        return out


def linear_header_forward(x, weight, label=None, *, compute_dtype=None):
    """Functional one-shot wrapper (note: the weight prep is hoisted only when
    you reuse a LinearHeaderPallas instance — prefer the class for real use)."""
    return LinearHeaderPallas(weight, compute_dtype=compute_dtype)(x, label)


# --------------------------------------------------------------------------- #
# Demo / checks
# --------------------------------------------------------------------------- #
if __name__ == "__main__":
    key = jax.random.PRNGKey(0)
    k_x, k_w, k_l, k_x2, k_w2 = jax.random.split(key, 5)

    # Small shapes consistent with the module.
    batch, in_features, out_features = 8, 32, 16
    x = jax.random.normal(k_x, (batch, in_features), dtype=jnp.float32)
    # nn.Linear-style init range: U(-1/sqrt(in), 1/sqrt(in)).
    bound = 1.0 / (in_features ** 0.5)
    weight = jax.random.uniform(k_w, (out_features, in_features),
                                dtype=jnp.float32, minval=-bound, maxval=bound)
    label = jax.random.randint(k_l, (batch,), 0, out_features)  # unused, as in reference

    header = LinearHeaderPallas(weight)            # weight prep hoisted here
    out = jax.block_until_ready(header(x, label))
    ref = x @ weight.T
    assert out.shape == (batch, out_features)
    assert jnp.allclose(out, ref, atol=1e-5, rtol=1e-5), "mismatch vs reference (small)"

    # Exercises balanced-tile M padding, K/N zero padding, multi-use of the header.
    B2, IN2, OUT2 = 300, 600, 130
    x2 = jax.random.normal(k_x2, (B2, IN2), dtype=jnp.float32)
    bound2 = 1.0 / (IN2 ** 0.5)
    w2 = jax.random.uniform(k_w2, (OUT2, IN2), dtype=jnp.float32,
                            minval=-bound2, maxval=bound2)
    header2 = LinearHeaderPallas(w2)
    out2 = jax.block_until_ready(header2(x2, None))
    ref2 = x2 @ w2.T
    assert out2.shape == (B2, OUT2)
    assert jnp.allclose(out2, ref2, atol=1e-4, rtol=1e-4), "mismatch vs reference (tiled)"

    # bf16-fed MXU path (perf recommendation): bf16 operands, f32 accumulation.
    header3 = LinearHeaderPallas(w2, compute_dtype=jnp.bfloat16)
    out3 = jax.block_until_ready(header3(x2, None))
    assert out3.shape == (B2, OUT2)
    assert jnp.allclose(out3, ref2, atol=5e-2, rtol=5e-2), "mismatch vs reference (bf16)"

    print("KERNEL_OK")
</pallas_src>

<mosaic_0001>
module attributes {stable_mosaic.version = 11 : i64} {
  func.func @_matmul_kernel_out_acc(%arg0: i32, %arg1: i32, %arg2: i32, %arg3: memref<8x128xf32, #tpu.memory_space<vmem>>, %arg4: memref<128x128xf32, #tpu.memory_space<vmem>>, %arg5: memref<8x128xf32, #tpu.memory_space<vmem>>) attributes {dimension_semantics = [#tpu.dimension_semantics<parallel>, #tpu.dimension_semantics<parallel>, #tpu.dimension_semantics<arbitrary>], iteration_bounds = array<i64: 1, 1, 1>, scalar_prefetch = 0 : i64, scratch_operands = 0 : i64, tpu.core_type = #tpu.core_type<tc>, window_params = [{transform_indices = @transform_0, window_bounds = array<i64: 8, 128>}, {transform_indices = @transform_1, window_bounds = array<i64: 128, 128>}, {transform_indices = @transform_2, window_bounds = array<i64: 8, 128>}]} {
    %c0_i32 = arith.constant 0 : i32
    %0 = arith.cmpi eq, %arg2, %c0_i32 : i32
    %1 = arith.extui %0 : i1 to i32
    %c0_i32_0 = arith.constant 0 : i32
    %2 = arith.cmpi ne, %1, %c0_i32_0 : i32
    scf.if %2 {
      %cst_8 = arith.constant 0.000000e+00 : f32
      %9 = vector.broadcast %cst_8 : f32 to vector<8x128xf32>
      %c0_9 = arith.constant 0 : index
      %c0_10 = arith.constant 0 : index
      %10 = vector.load %arg5[%c0_9, %c0_10] : memref<8x128xf32, #tpu.memory_space<vmem>>, vector<8x128xf32>
      tpu.vector_store %arg5[%c0_9, %c0_10], %9 {strides = array<i32>} : memref<8x128xf32, #tpu.memory_space<vmem>>, vector<8x128xf32>,
    } else {
    }
    %c0 = arith.constant 0 : index
    %c0_1 = arith.constant 0 : index
    %3 = vector.load %arg5[%c0, %c0_1] : memref<8x128xf32, #tpu.memory_space<vmem>>, vector<8x128xf32>
    %c0_2 = arith.constant 0 : index
    %c0_3 = arith.constant 0 : index
    %4 = vector.load %arg3[%c0_2, %c0_3] : memref<8x128xf32, #tpu.memory_space<vmem>>, vector<8x128xf32>
    %c0_4 = arith.constant 0 : index
    %c0_5 = arith.constant 0 : index
    %5 = vector.load %arg4[%c0_4, %c0_5] : memref<128x128xf32, #tpu.memory_space<vmem>>, vector<128x128xf32>
    %cst = arith.constant dense<0.000000e+00> : vector<8x128xf32>
    %6 = tpu.matmul %4, %5, %cst {dimension_numbers = #tpu.dot_dimension_numbers<[1], [0], [0], [1], [0, 0, 1, 1], [], []>} : vector<8x128xf32>, vector<128x128xf32>, vector<8x128xf32> -> vector<8x128xf32>
    %7 = arith.addf %3, %6 : vector<8x128xf32>
    %c0_6 = arith.constant 0 : index
    %c0_7 = arith.constant 0 : index
    %8 = vector.load %arg5[%c0_6, %c0_7] : memref<8x128xf32, #tpu.memory_space<vmem>>, vector<8x128xf32>
    tpu.vector_store %arg5[%c0_6, %c0_7], %7 {strides = array<i32>} : memref<8x128xf32, #tpu.memory_space<vmem>>, vector<8x128xf32>,
    return
  }
  func.func @transform_0(%arg0: i32, %arg1: i32, %arg2: i32) -> (i32, i32) {
    %c0_i32 = arith.constant 0 : i32
    return %arg0, %arg2 : i32, i32
  }
  func.func @transform_1(%arg0: i32, %arg1: i32, %arg2: i32) -> (i32, i32) {
    %c0_i32 = arith.constant 0 : i32
    return %arg2, %arg1 : i32, i32
  }
  func.func @transform_2(%arg0: i32, %arg1: i32, %arg2: i32) -> (i32, i32) {
    %c0_i32 = arith.constant 0 : i32
    return %arg0, %arg1 : i32, i32
  }
}

</mosaic_0001>

<bundles_post_ra>
// kernel: tpu_custom_call.1
= control target key start
LH: loop header
LB: loop body
LE: loop exit
PB: predicated region body
PF: predicated region fallthrough
CT: control target
= control target key end

     0   :  { %7 = vsyncpa [#allocation3], 0  ;;  %s305_s0 = inlined_call_operand.hbm [shape: f32[8,128], index: 0, kind: input, shape index: {}]   ;;  %s306_s1 = inlined_call_operand.hbm [shape: f32[128,128], index: 1, kind: input, shape index: {}]   ;;  %s307_s2 = inlined_call_operand.hbm [shape: f32[8,128], index: 2, kind: output, shape index: {}]  }
   0x1   :  { %8 = vsyncpa [#allocation6], 0 }
   0x2   :  { %9 = vsyncpa [#allocation4], 0  ;;  %s274_s9 = smov [#allocation2]   ;;  %s275_s11 = smov [#allocation5]  }
   0x3   :  { %s16_s10 = sshll.u32 %s274_s9, 4  ;;  %s25_s12 = sshll.u32 %s275_s11, 4  ;;  %s17_s10 = int_to_ptr.vmem [resolvable:$true] %s16_s10  ;;  %s26_s12 = int_to_ptr.vmem [resolvable:$true] %s25_s12 }
   0x4   :  { %s216_s13 = scalar_lea.vmem %s17_s10, 128  ;;  %p221_p1 = scmp.lt.s32.totalorder %s17_s10, %s17_s10 }
   0x5   :  { %p217_p0 = scmp.ne.s32.totalorder %s17_s10, %s216_s13  ;;  %p222_p2 = scmp.lt.s32.totalorder %s216_s13, %s216_s13 }
   0x7   :  { %p223_p3 = por %p222_p2, %p221_p1 }
   0x9   :  { %p224_p4 = pnand %p223_p3, %p217_p0 }
   0xb   :  { %227 = shalt.err (!%p224_p4)
}
   0xc   :  { %19 = dma.hbm_to_vmem [thread:$0]  %s305_s0, 128, %s17_s10, [#allocation3]  }
   0xd   :  { %s236_s16 = scalar_lea.vmem %s26_s12, 2048  ;;  %p241_p6 = scmp.lt.s32.totalorder %s26_s12, %s26_s12 }
   0xe   :  { %p237_p5 = scmp.ne.s32.totalorder %s26_s12, %s236_s16  ;;  %p242_p7 = scmp.lt.s32.totalorder %s236_s16, %s236_s16 }
  0x10   :  { %p243_p8 = por %p242_p7, %p241_p6 }
  0x12   :  { %p244_p9 = pnand %p243_p8, %p237_p5 }
  0x14   :  { %247 = shalt.err (!%p244_p9)
}
  0x15   :  { %s276_s17 = smov 128   ;;  %s277_s18 = smov 8  }
  0x16   :  { %31 = dma.hbm_to_vmem [thread:$0]  %s306_s1, 2048, %s26_s12, [#allocation6], %s276_s17, %s276_s17, %s277_s18  }
  0x17   :  { %268 = dma.done.wait [#allocation3], 128  }
  0x18   :  { %269 = vsyncadd [#allocation3], 4294967168 }
  0x19   :  { %270 = dma.done.wait [#allocation6], 2048  }
  0x1a   :  { %271 = vsyncadd [#allocation6], 4294965248  ;;  %v278_v0 = vmov 0.0   ;;  %vm279_vm0 = vmmov 0   ;;  %v60_v1 = vld [vmem:[#allocation5 + $0x78] sm:$0xff]  ;;  %v59_v2 = vld [vmem:[#allocation5 + $0x70] sm:$0xff] }
  0x1b   :  { %166 = vmatprep.subr.mxu0 %v278_v0  ;;  %198 = vmatprep.mubr.msk.f32.mxu0 %vm279_vm0, %v278_v0  ;;  %v58_v3 = vld [vmem:[#allocation5 + $0x68] sm:$0xff]  ;;  %v57_v4 = vld [vmem:[#allocation5 + $0x60] sm:$0xff]  ;;  %v56_v5 = vld [vmem:[#allocation5 + $0x58] sm:$0xff]  ;;  %s280_s0 = smov [#allocation7]  }
  0x1c   :  { %167 = vmatpush3.msra.mxu0 %v60_v1  ;;  %v55_v6 = vld [vmem:[#allocation5 + $0x50] sm:$0xff]  ;;  %v54_v7 = vld [vmem:[#allocation5 + $0x48] sm:$0xff]  ;;  %v53_v8 = vld [vmem:[#allocation5 + $0x40] sm:$0xff]  ;;  %s139_s1 = sshll.u32 %s280_s0, 4  ;;  %s140_s1 = int_to_ptr.vmem [resolvable:$true] %s139_s1 }
  0x1d   :  { %168 = vmatprep.subr.mxu0 %v278_v0  ;;  %v52_v9 = vld [vmem:[#allocation5 + $0x38] sm:$0xff]  ;;  %v51_v10 = vld [vmem:[#allocation5 + $0x30] sm:$0xff]  ;;  %v50_v11 = vld [vmem:[#allocation5 + $0x28] sm:$0xff]  ;;  %s248_s21 = scalar_lea.vmem %s140_s1, 128  ;;  %p253_p11 = scmp.lt.s32.totalorder %s140_s1, %s140_s1 }
  0x1e   :  { %169 = vmatpush3.msra.mxu0 %v59_v2  ;;  %v49_v12 = vld [vmem:[#allocation5 + $0x20] sm:$0xff]  ;;  %v48_v13 = vld [vmem:[#allocation5 + $0x18] sm:$0xff]  ;;  %v47_v14 = vld [vmem:[#allocation5 + $0x10] sm:$0xff]  ;;  %p249_p10 = scmp.ne.s32.totalorder %s140_s1, %s248_s21  ;;  %p254_p12 = scmp.lt.s32.totalorder %s248_s21, %s248_s21 }
  0x1f   :  { %170 = vmatprep.subr.mxu0 %v278_v0  ;;  %v46_v15 = vld [vmem:[#allocation5 + $0x8] sm:$0xff]  ;;  %v45_v16 = vld [vmem:[#allocation5] sm:$0xff]  ;;  %v44_v17 = vld [vmem:[#allocation2] sm:$0xff] }
  0x20   :  { %171 = vmatpush3.msra.mxu0 %v58_v3  ;;  %p255_p13 = por %p254_p12, %p253_p11 }
  0x21   :  { %172 = vmatprep.subr.mxu0 %v278_v0 }
  0x22   :  { %173 = vmatpush3.msra.mxu0 %v57_v4  ;;  %p256_p0 = pnand %p255_p13, %p249_p10 }
  0x23   :  { %174 = vmatprep.subr.mxu0 %v278_v0 }
  0x24   :  { %175 = vmatpush3.msra.mxu0 %v56_v5 }
  0x25   :  { %176 = vmatprep.subr.mxu0 %v278_v0 }
  0x26   :  { %177 = vmatpush3.msra.mxu0 %v55_v6 }
  0x27   :  { %178 = vmatprep.subr.mxu0 %v278_v0 }
  0x28   :  { %179 = vmatpush3.msra.mxu0 %v54_v7 }
  0x29   :  { %180 = vmatprep.subr.mxu0 %v278_v0 }
  0x2a   :  { %181 = vmatpush3.msra.mxu0 %v53_v8 }
  0x2b   :  { %182 = vmatprep.subr.mxu0 %v278_v0 }
  0x2c   :  { %183 = vmatpush3.msra.mxu0 %v52_v9 }
  0x2d   :  { %184 = vmatprep.subr.mxu0 %v278_v0 }
  0x2e   :  { %185 = vmatpush3.msra.mxu0 %v51_v10 }
  0x2f   :  { %186 = vmatprep.subr.mxu0 %v278_v0 }
  0x30   :  { %187 = vmatpush3.msra.mxu0 %v50_v11 }
  0x31   :  { %188 = vmatprep.subr.mxu0 %v278_v0 }
  0x32   :  { %189 = vmatpush3.msra.mxu0 %v49_v12 }
  0x33   :  { %190 = vmatprep.subr.mxu0 %v278_v0 }
  0x34   :  { %191 = vmatpush3.msra.mxu0 %v48_v13 }
  0x35   :  { %192 = vmatprep.subr.mxu0 %v278_v0 }
  0x36   :  { %193 = vmatpush3.msra.mxu0 %v47_v14 }
  0x37   :  { %194 = vmatprep.subr.mxu0 %v278_v0 }
  0x38   :  { %195 = vmatpush3.msra.mxu0 %v46_v15 }
  0x39   :  { %196 = vmatprep.subr.mxu0 %v278_v0 }
  0x3a   :  { %197 = vmatpush3.msra.mxu0 %v45_v16 }
  0x3b   :  { %199 = vmatmul.mubr.f32.vlgmr.msra.gmra.mxu0 %v44_v17 }
  0xfb   :  { %v127_v18 = vpop.f32.mrf.mxu0 }
  0xfc   :  { %132 = vst [vmem:[#allocation7] sm:$0xff] %v127_v18 }
  0xfd   :  { %v200_v19 = vpop.f32.mrf.mxu0 }
  0xfe   :  { %259 = shalt.err (!%p256_p0)
}
  0xff   :  { %142 = dma.vmem_to_hbm [thread:$0]  %s140_s1, 128, %s307_s2, [#allocation4]  }
 0x100   :  { %272 = dma.done.wait [#allocation4], 128  }
 0x101   :  { %273 = vsyncadd [#allocation4], 4294967168 }
 0x102   :  { %146 = vsyncpa [#allocation3], 1 }
 0x103   :  { %147 = vsyncpa [#allocation6], 1 }
 0x104   :  { %148 = vsyncpa [#allocation4], 1 }

</bundles_post_ra>
